<compile_context>
chip_gen: v7x
topology: tpu7x:2x2x1
jax: 0.10.0
libtpu: 0.0.40
codegen_flags: <defaults>
</compile_context>

<pallas_src>
import numpy as np
import jax
import jax.numpy as jnp
from jax.experimental import pallas as pl
from jax.experimental.pallas import tpu as pltpu

# ----------------------- config (HyenaGLTConfig stand-in) --------------------
HIDDEN = 32          # config.hidden_size (d_model)
INTER = 64           # config.intermediate_size
SEQ = 32             # input sequence length
BATCH = 2
MAX_POS = 64         # config.max_position_embeddings (l_max)
ORDER = 2            # config.hyena_order
MIN_PATCH = 4        # config.min_patch_size
MAX_PATCH = 8        # config.max_patch_size
EPS = 1e-5           # nn.LayerNorm default eps
_SQRT2_INV = 0.7071067811865475
# dropout / hyena_dropout = 0.0  (eval mode -> identity)


# ----------------------------- parameter init --------------------------------
def init_params(key):
    D, D2, D4, I = HIDDEN, HIDDEN // 2, HIDDEN // 4, INTER
    ks = jax.random.split(key, 16)
    s = 0.1
    p = {}
    # AdaptiveTokenMerger
    p["wc1"] = s * jax.random.normal(ks[0], (D, D4), jnp.float32)
    p["bc1"] = jnp.zeros((1, D4), jnp.float32)
    p["wc2"] = s * jax.random.normal(ks[1], (D4, 1), jnp.float32)
    p["bc2"] = jnp.zeros((1, 1), jnp.float32)
    # pattern_detector: Conv1d(D, D//2, k=3, padding=1, groups=D//4)
    conv_w = np.asarray(s * jax.random.normal(ks[2], (D2, 4, 3), jnp.float32))
    p["bconv"] = s * jax.random.normal(ks[3], (1, D2), jnp.float32)
    out_per_group = D2 // (D // 4)   # 2
    in_per_group = D // (D // 4)     # 4
    wfull = np.zeros((3, D, D2), np.float32)   # expand grouped conv to block-diag matmuls
    for oc in range(D2):
        g = oc // out_per_group
        for k in range(3):
            wfull[k, g * in_per_group:(g + 1) * in_per_group, oc] = conv_w[oc, :, k]
    p["wconv"] = jnp.asarray(wfull)                       # (3, D, D//2)
    # boundary_predictor on concat([x, pattern]) -> split first weight
    p["wb1x"] = s * jax.random.normal(ks[4], (D, D4), jnp.float32)
    p["wb1p"] = s * jax.random.normal(ks[5], (D2, D4), jnp.float32)
    p["bb1"] = jnp.zeros((1, D4), jnp.float32)
    p["wb2"] = s * jax.random.normal(ks[6], (D4, 1), jnp.float32)
    p["bb2"] = jnp.zeros((1, 1), jnp.float32)
    # (merge_proj / pos_adjustment exist in __init__ but are unused in forward)
    # LayerNorms
    p["g1"] = jnp.ones((1, D), jnp.float32)
    p["b1"] = jnp.zeros((1, D), jnp.float32)
    p["g2"] = jnp.ones((1, D), jnp.float32)
    p["b2"] = jnp.zeros((1, D), jnp.float32)
    # Hyena operator (order = 2)
    C = (ORDER + 1) * D
    p["win"] = s * jax.random.normal(ks[7], (D, C), jnp.float32)
    p["bin"] = jnp.zeros((1, C), jnp.float32)
    p["ws"] = s * jax.random.normal(ks[8], (3, C), jnp.float32)     # depthwise short-filter taps
    p["bs"] = jnp.zeros((1, C), jnp.float32)
    decay = jnp.exp(-0.1 * jnp.arange(MAX_POS, dtype=jnp.float32))[None, :]
    p["filt"] = s * jax.random.normal(ks[9], (D, MAX_POS), jnp.float32) * decay
    p["fb"] = s * jax.random.normal(ks[10], (1, D), jnp.float32)
    p["wout"] = s * jax.random.normal(ks[11], (D, D), jnp.float32)
    p["bout"] = jnp.zeros((1, D), jnp.float32)
    # FFN
    p["w1"] = s * jax.random.normal(ks[12], (D, I), jnp.float32)
    p["bf1"] = jnp.zeros((1, I), jnp.float32)
    p["w2"] = s * jax.random.normal(ks[13], (I, D), jnp.float32)
    p["bf2"] = jnp.zeros((1, D), jnp.float32)
    return p


def _rep_spec(shape):
    """Full-array block, same block for every grid step (rank-1 grids)."""
    n = len(shape)
    return pl.BlockSpec(tuple(shape), lambda b, _n=n: (0,) * _n)


# ------------------- kernel 1: AdaptiveTokenMerger scoring -------------------
# Transposed layout: activations are (features, B*L) so the token axis is on
# lanes and the merge_signal output is a single lane-dense (1, B*L) store.
def _merger_score_kernel(xt_ref, wbig_ref, bc1_ref, bb1_ref, bconv_ref,
                         sp_ref, sn_ref, wb1p_ref, wc2_ref, bc2_ref,
                         wb2_ref, bb2_ref, sig_ref):
    D4 = wc2_ref.shape[1]          # d_model // 4
    D2 = wb1p_ref.shape[1]         # d_model // 2
    xt = xt_ref[...]                                               # (D, B*L)
    # one fused matmul: [content L1 ; boundary L1 (x part) ; conv taps k=0,1,2]
    big = jnp.dot(wbig_ref[...], xt, preferred_element_type=jnp.float32)
    xh_c = big[0:D4]                                               # content scorer pre-act
    xh_b = big[D4:2 * D4]                                          # boundary (x part)
    a0 = big[2 * D4:2 * D4 + D2]                                   # conv tap: prev token
    a1 = big[2 * D4 + D2:2 * D4 + 2 * D2]                          # conv tap: current token
    a2 = big[2 * D4 + 2 * D2:2 * D4 + 3 * D2]                      # conv tap: next token
    # grouped Conv1d(k=3, pad=1): token shifts = block-diag shift matrices
    # (zero at batch edges), so no scratch / partial-store round trip.
    pat = (jnp.dot(a0, sp_ref[...], preferred_element_type=jnp.float32)
           + a1
           + jnp.dot(a2, sn_ref[...], preferred_element_type=jnp.float32)
           + bconv_ref[...])                                       # (D2, B*L)
    hc = jnp.maximum(xh_c + bc1_ref[...], 0.0)                     # (D4, B*L)
    hb = jnp.maximum(xh_b
                     + jnp.dot(wb1p_ref[...], pat, preferred_element_type=jnp.float32)
                     + bb1_ref[...], 0.0)                          # (D4, B*L)
    cs = jax.nn.sigmoid(jnp.dot(wc2_ref[...], hc, preferred_element_type=jnp.float32)
                        + bc2_ref[...])                            # (1, B*L)
    bs = jax.nn.sigmoid(jnp.dot(wb2_ref[...], hb, preferred_element_type=jnp.float32)
                        + bb2_ref[...])                            # (1, B*L)
    sig_ref[...] = cs * (1.0 - bs)                                 # lane-dense merge signal


def merger_scores(x, p):
    B, L, D = x.shape
    D4, D2 = D // 4, D // 2
    BL = B * L
    # token axis -> lanes
    xt = jnp.transpose(x, (2, 0, 1)).reshape(D, BL)
    # ---- host-side weight refactoring (free; fuses the tiny matmuls) ----
    wconv = np.asarray(p["wconv"])                                   # (3, D, D2)
    wconv_t = wconv.transpose(0, 2, 1).reshape(3 * D2, D)            # stack of wfull[k].T
    wbig = np.concatenate([np.asarray(p["wc1"]).T,
                           np.asarray(p["wb1x"]).T,
                           wconv_t], axis=0).astype(np.float32)      # (2*D4+3*D2, D)
    # block-diag shift matrices: prev/next token within each batch, 0 at edges
    sp = np.kron(np.eye(B, dtype=np.float32), np.eye(L, k=1, dtype=np.float32))
    sn = np.kron(np.eye(B, dtype=np.float32), np.eye(L, k=-1, dtype=np.float32))
    args = [xt,
            wbig,
            np.asarray(p["bc1"]).T,          # (D4, 1)
            np.asarray(p["bb1"]).T,          # (D4, 1)
            np.asarray(p["bconv"]).T,        # (D2, 1)
            sp, sn,
            np.asarray(p["wb1p"]).T,         # (D4, D2)
            np.asarray(p["wc2"]).T,          # (1, D4)
            np.asarray(p["bc2"]),            # (1, 1)
            np.asarray(p["wb2"]).T,          # (1, D4)
            np.asarray(p["bb2"])]            # (1, 1)
    args = [jnp.asarray(a, jnp.float32) for a in args]
    in_specs = [_rep_spec(a.shape) for a in args]
    sig = pl.pallas_call(
        _merger_score_kernel,
        out_shape=jax.ShapeDtypeStruct((1, BL), jnp.float32),
        grid=(1,),                                      # batch folded into lanes
        in_specs=in_specs,
        out_specs=pl.BlockSpec((1, BL), lambda b: (0, 0)),
        compiler_params=pltpu.CompilerParams(dimension_semantics=("arbitrary",)),
    )(*args)
    return sig.reshape(B, L)


# -------- host glue: patch-size constraints + variable-length merging --------
# TODO(synk): constraint enforcement + ragged patch merging are data-dependent
#             dynamic-shape loops with no clean Pallas equivalent -> host numpy.
def _merge_patch_np(patch):
    if patch.shape[0] == 1:
        return patch[0]
    s = np.sum(patch.astype(np.float32) ** 2, axis=-1)
    s = s - s.max()
    w = np.exp(s)
    w = w / w.sum()
    return np.sum(patch * w[:, None], axis=0)


def merge_tokens_host(x_np, boundaries_np):
    B, L, D = x_np.shape
    boundaries = boundaries_np.astype(np.float32).copy()
    # enforce min/max patch-size constraints (exact port of the torch loops)
    for b in range(B):
        pos = np.nonzero(boundaries[b])[0]
        if len(pos) == 0:
            continue
        pos = np.concatenate([[0], pos, [L - 1]]).astype(np.int64)
        nb = np.zeros(L, np.float32)
        cur = 0
        for i in range(1, len(pos)):
            psz = int(pos[i]) - cur
            if psz < MIN_PATCH:
                continue
            elif psz > MAX_PATCH:
                nsp = (psz + MAX_PATCH - 1) // MAX_PATCH
                ssz = psz // nsp
                for j in range(1, nsp):
                    sp = cur + j * ssz
                    if sp < L:
                        nb[sp] = 1.0
            nb[int(pos[i])] = 1.0
            cur = int(pos[i])
        boundaries[b] = nb
    # perform merging
    merged_seqs, seg_list = [], []
    for b in range(B):
        pos = np.nonzero(boundaries[b])[0]
        if len(pos) == 0:
            merged_seqs.append(x_np[b])
            seg_list.append(np.zeros(L, np.float32))
            continue
        pos = np.unique(np.concatenate([[0], pos, [L]]).astype(np.int64))
        patches, segb = [], []
        for i in range(len(pos) - 1):
            patch = x_np[b, int(pos[i]):int(pos[i + 1])]
            patches.append(_merge_patch_np(patch))
            segb.append(1.0 if i > 0 else 0.0)
        merged_seqs.append(np.stack(patches, axis=0))
        seg_list.append(np.asarray(segb, np.float32))
    max_len = max(s.shape[0] for s in merged_seqs)
    mt = np.zeros((B, max_len, D), np.float32)
    sb = np.zeros((B, max_len), np.float32)
    for b in range(B):
        n = merged_seqs[b].shape[0]
        mt[b, :n] = merged_seqs[b]
        sb[b, :n] = seg_list[b]
    return mt, sb


# ------------- kernel 2: norm1 -> Hyena -> res -> norm2 -> FFN -> res --------
def _hyena_ffn_kernel(h_ref, g1, b1, win, bin_, ws, bs_, s1, s2, ft, fb,
                      wout, bout, g2, b2, w1, bf1, w2, bf2, o_ref, vpad_ref):
    Lp = h_ref.shape[1]
    D = h_ref.shape[2]
    x = h_ref[0]                                                   # (Lp, D)

    def layer_norm(v, g_ref, b_ref):
        mu = jnp.mean(v, axis=-1, keepdims=True)
        var = jnp.mean((v - mu) ** 2, axis=-1, keepdims=True)
        return (v - mu) * jax.lax.rsqrt(var + EPS) * g_ref[...] + b_ref[...]

    # ---- norm1 + Hyena operator (order = 2) + residual ----
    xn = layer_norm(x, g1, b1)
    u = jnp.dot(xn, win[...], preferred_element_type=jnp.float32) + bin_[...]   # (Lp, 3D)
    # depthwise causal short filter (Conv1d k=3, causal): shifts via tiny
    # Toeplitz matmuls (no scratch round trip)
    u1 = jnp.dot(s1[...], u, preferred_element_type=jnp.float32)   # u[t-1]
    u2 = jnp.dot(s2[...], u, preferred_element_type=jnp.float32)   # u[t-2]
    wsa = ws[...]                                                  # (3, 3D)
    uc = u2 * wsa[0:1, :] + u1 * wsa[1:2, :] + u * wsa[2:3, :] + bs_[...]
    x0 = uc[:, 0:D]
    x1 = uc[:, D:2 * D]
    v = uc[:, 2 * D:3 * D] * x1                                    # first gate
    # per-channel causal long conv as a tap loop (no L^2 Toeplitz tensor):
    #   y[t,c] = sum_{k<min(t+1,MAX_POS)} filt[c,k] * v[t-k,c] + fb[c]*v[t,c]
    vpad_ref[pl.ds(0, MAX_POS), :] = jnp.zeros((MAX_POS, D), jnp.float32)
    vpad_ref[pl.ds(MAX_POS, Lp), :] = v
    ftv = ft[...]                                                  # (MAX_POS, D)
    acc = v * fb[...]                                              # bias tap
    for k in range(min(Lp, MAX_POS)):                              # static offsets
        acc = acc + vpad_ref[pl.ds(MAX_POS - k, Lp), :] * ftv[k:k + 1, :]
    y = acc * x0                                                   # output gate
    y = jnp.dot(y, wout[...], preferred_element_type=jnp.float32) + bout[...]
    h1 = x + y                                                     # residual 1
    # ---- norm2 + FFN (exact GELU, dropout = 0 -> identity) + residual ----
    h1n = layer_norm(h1, g2, b2)
    f = jnp.dot(h1n, w1[...], preferred_element_type=jnp.float32) + bf1[...]
    f = 0.5 * f * (1.0 + jax.lax.erf(f * _SQRT2_INV))              # torch nn.GELU (exact)
    f = jnp.dot(f, w2[...], preferred_element_type=jnp.float32) + bf2[...]
    o_ref[0] = h1 + f


def hyena_ffn_layer(h, p):
    B, Lp, D = h.shape
    # causal shift Toeplitz matrices for the k=3 short filter
    s1 = jnp.asarray(np.eye(Lp, k=-1, dtype=np.float32))
    s2 = jnp.asarray(np.eye(Lp, k=-2, dtype=np.float32))
    ft = jnp.asarray(np.asarray(p["filt"]).T.astype(np.float32))   # (MAX_POS, D)
    weights = [p["g1"], p["b1"], p["win"], p["bin"], p["ws"], p["bs"],
               s1, s2, ft, p["fb"], p["wout"], p["bout"],
               p["g2"], p["b2"], p["w1"], p["bf1"], p["w2"], p["bf2"]]
    in_specs = ([pl.BlockSpec((1, Lp, D), lambda b: (b, 0, 0))]
                + [_rep_spec(tuple(np.shape(w))) for w in weights])
    return pl.pallas_call(
        _hyena_ffn_kernel,
        out_shape=jax.ShapeDtypeStruct((B, Lp, D), jnp.float32),
        grid=(B,),
        in_specs=in_specs,
        out_specs=pl.BlockSpec((1, Lp, D), lambda b: (b, 0, 0)),
        scratch_shapes=[pltpu.VMEM((MAX_POS + Lp, D), jnp.float32)],
        compiler_params=pltpu.CompilerParams(dimension_semantics=("parallel",)),
    )(h, *weights)


# ------------------------------ full layer ------------------------------------
def dynamic_hyena_layer(hidden_states, params):
    B, L, D = hidden_states.shape
    # 1) AdaptiveTokenMerger scoring (Pallas, lane-dense output)
    sig = merger_scores(hidden_states, params)                     # (B, L)
    # 2) 0.7-quantile threshold + boundary mask on device (torch.quantile 'linear')
    thr = jnp.quantile(sig, 0.7, axis=1, keepdims=True)
    boundaries = (sig < thr).astype(jnp.float32)
    # 3) ragged constraint enforcement + merging on host (single device_get)
    x_np, b_np = jax.device_get((hidden_states, boundaries))
    merged_np, seg_np = merge_tokens_host(np.asarray(x_np), np.asarray(b_np))
    max_len = merged_np.shape[1]
    # bucket the merged length to a multiple of 8 (stable kernel shapes, no
    # per-length recompiles); trailing zero rows are causally inert.
    l_pad = max(8, ((max_len + 7) // 8) * 8)
    if l_pad != max_len:
        merged_np = np.pad(merged_np, ((0, 0), (0, l_pad - max_len), (0, 0)))
    merged = jnp.asarray(merged_np, jnp.float32)
    # 4) norm1 -> Hyena -> residual -> norm2 -> FFN -> residual (Pallas)
    out = hyena_ffn_layer(merged, params)
    out = out[:, :max_len, :]
    return out, jnp.asarray(seg_np)


if __name__ == "__main__":
    key = jax.random.PRNGKey(0)
    kx, kp = jax.random.split(key)
    x = jax.random.normal(kx, (BATCH, SEQ, HIDDEN), jnp.float32)
    params = init_params(kp)
    out, seg = dynamic_hyena_layer(x, params)
    out = jax.block_until_ready(out)
    assert out.ndim == 3 and out.shape[0] == BATCH and out.shape[2] == HIDDEN
    assert bool(jnp.all(jnp.isfinite(out)))
    print("KERNEL_OK")
</pallas_src>

<mosaic_0001>
module attributes {stable_mosaic.version = 11 : i64} {
  func.func @_merger_score_kernel(%arg0: i32, %arg1: memref<32x64xf32, #tpu.memory_space<vmem>>, %arg2: memref<64x32xf32, #tpu.memory_space<vmem>>, %arg3: memref<8x1xf32, #tpu.memory_space<vmem>>, %arg4: memref<8x1xf32, #tpu.memory_space<vmem>>, %arg5: memref<16x1xf32, #tpu.memory_space<vmem>>, %arg6: memref<64x64xf32, #tpu.memory_space<vmem>>, %arg7: memref<64x64xf32, #tpu.memory_space<vmem>>, %arg8: memref<8x16xf32, #tpu.memory_space<vmem>>, %arg9: memref<1x8xf32, #tpu.memory_space<vmem>>, %arg10: memref<1x1xf32, #tpu.memory_space<vmem>>, %arg11: memref<1x8xf32, #tpu.memory_space<vmem>>, %arg12: memref<1x1xf32, #tpu.memory_space<vmem>>, %arg13: memref<1x64xf32, #tpu.memory_space<vmem>>) attributes {dimension_semantics = [#tpu.dimension_semantics<arbitrary>], iteration_bounds = array<i64: 1>, scalar_prefetch = 0 : i64, scratch_operands = 0 : i64, tpu.core_type = #tpu.core_type<tc>, window_params = [{pipeline_mode = #tpu.pipeline_mode<synchronous>, transform_indices = @transform_0, window_bounds = array<i64: 32, 64>}, {pipeline_mode = #tpu.pipeline_mode<synchronous>, transform_indices = @transform_1, window_bounds = array<i64: 64, 32>}, {pipeline_mode = #tpu.pipeline_mode<synchronous>, transform_indices = @transform_2, window_bounds = array<i64: 8, 1>}, {pipeline_mode = #tpu.pipeline_mode<synchronous>, transform_indices = @transform_3, window_bounds = array<i64: 8, 1>}, {pipeline_mode = #tpu.pipeline_mode<synchronous>, transform_indices = @transform_4, window_bounds = array<i64: 16, 1>}, {pipeline_mode = #tpu.pipeline_mode<synchronous>, transform_indices = @transform_5, window_bounds = array<i64: 64, 64>}, {pipeline_mode = #tpu.pipeline_mode<synchronous>, transform_indices = @transform_6, window_bounds = array<i64: 64, 64>}, {pipeline_mode = #tpu.pipeline_mode<synchronous>, transform_indices = @transform_7, window_bounds = array<i64: 8, 16>}, {pipeline_mode = #tpu.pipeline_mode<synchronous>, transform_indices = @transform_8, window_bounds = array<i64: 1, 8>}, {pipeline_mode = #tpu.pipeline_mode<synchronous>, transform_indices = @transform_9, window_bounds = array<i64: 1, 1>}, {pipeline_mode = #tpu.pipeline_mode<synchronous>, transform_indices = @transform_10, window_bounds = array<i64: 1, 8>}, {pipeline_mode = #tpu.pipeline_mode<synchronous>, transform_indices = @transform_11, window_bounds = array<i64: 1, 1>}, {pipeline_mode = #tpu.pipeline_mode<synchronous>, transform_indices = @transform_12, window_bounds = array<i64: 1, 64>}]} {
    %c0 = arith.constant 0 : index
    %c0_0 = arith.constant 0 : index
    %0 = vector.load %arg1[%c0, %c0_0] : memref<32x64xf32, #tpu.memory_space<vmem>>, vector<32x64xf32>
    %c0_1 = arith.constant 0 : index
    %c0_2 = arith.constant 0 : index
    %1 = vector.load %arg2[%c0_1, %c0_2] : memref<64x32xf32, #tpu.memory_space<vmem>>, vector<64x32xf32>
    %cst = arith.constant dense<0.000000e+00> : vector<64x64xf32>
    %2 = tpu.matmul %1, %0, %cst {dimension_numbers = #tpu.dot_dimension_numbers<[1], [0], [0], [1], [0, 0, 1, 1], [], []>} : vector<64x32xf32>, vector<32x64xf32>, vector<64x64xf32> -> vector<64x64xf32>
    %3 = vector.extract_strided_slice %2 {offsets = [0, 0], sizes = [8, 64], strides = [1, 1]} : vector<64x64xf32> to vector<8x64xf32>
    %4 = vector.extract_strided_slice %2 {offsets = [8, 0], sizes = [8, 64], strides = [1, 1]} : vector<64x64xf32> to vector<8x64xf32>
    %5 = vector.extract_strided_slice %2 {offsets = [16, 0], sizes = [16, 64], strides = [1, 1]} : vector<64x64xf32> to vector<16x64xf32>
    %6 = vector.extract_strided_slice %2 {offsets = [32, 0], sizes = [16, 64], strides = [1, 1]} : vector<64x64xf32> to vector<16x64xf32>
    %7 = vector.extract_strided_slice %2 {offsets = [48, 0], sizes = [16, 64], strides = [1, 1]} : vector<64x64xf32> to vector<16x64xf32>
    %c0_3 = arith.constant 0 : index
    %c0_4 = arith.constant 0 : index
    %8 = vector.load %arg6[%c0_3, %c0_4] : memref<64x64xf32, #tpu.memory_space<vmem>>, vector<64x64xf32>
    %cst_5 = arith.constant dense<0.000000e+00> : vector<16x64xf32>
    %9 = tpu.matmul %5, %8, %cst_5 {dimension_numbers = #tpu.dot_dimension_numbers<[1], [0], [0], [1], [0, 0, 1, 1], [], []>} : vector<16x64xf32>, vector<64x64xf32>, vector<16x64xf32> -> vector<16x64xf32>
    %10 = arith.addf %9, %6 : vector<16x64xf32>
    %c0_6 = arith.constant 0 : index
    %c0_7 = arith.constant 0 : index
    %11 = vector.load %arg7[%c0_6, %c0_7] : memref<64x64xf32, #tpu.memory_space<vmem>>, vector<64x64xf32>
    %cst_8 = arith.constant dense<0.000000e+00> : vector<16x64xf32>
    %12 = tpu.matmul %7, %11, %cst_8 {dimension_numbers = #tpu.dot_dimension_numbers<[1], [0], [0], [1], [0, 0, 1, 1], [], []>} : vector<16x64xf32>, vector<64x64xf32>, vector<16x64xf32> -> vector<16x64xf32>
    %13 = arith.addf %10, %12 : vector<16x64xf32>
    %c0_9 = arith.constant 0 : index
    %c0_10 = arith.constant 0 : index
    %14 = vector.load %arg5[%c0_9, %c0_10] : memref<16x1xf32, #tpu.memory_space<vmem>>, vector<16x1xf32>
    %15 = vector.broadcast %14 : vector<16x1xf32> to vector<16x64xf32>
    %16 = arith.addf %13, %15 : vector<16x64xf32>
    %c0_11 = arith.constant 0 : index
    %c0_12 = arith.constant 0 : index
    %17 = vector.load %arg3[%c0_11, %c0_12] : memref<8x1xf32, #tpu.memory_space<vmem>>, vector<8x1xf32>
    %18 = vector.broadcast %17 : vector<8x1xf32> to vector<8x64xf32>
    %19 = arith.addf %3, %18 : vector<8x64xf32>
    %cst_13 = arith.constant 0.000000e+00 : f32
    %20 = vector.broadcast %cst_13 : f32 to vector<8x64xf32>
    %21 = arith.maximumf %19, %20 : vector<8x64xf32>
    %c0_14 = arith.constant 0 : index
    %c0_15 = arith.constant 0 : index
    %22 = vector.load %arg8[%c0_14, %c0_15] : memref<8x16xf32, #tpu.memory_space<vmem>>, vector<8x16xf32>
    %cst_16 = arith.constant dense<0.000000e+00> : vector<8x64xf32>
    %23 = tpu.matmul %22, %16, %cst_16 {dimension_numbers = #tpu.dot_dimension_numbers<[1], [0], [0], [1], [0, 0, 1, 1], [], []>} : vector<8x16xf32>, vector<16x64xf32>, vector<8x64xf32> -> vector<8x64xf32>
    %24 = arith.addf %4, %23 : vector<8x64xf32>
    %c0_17 = arith.constant 0 : index
    %c0_18 = arith.constant 0 : index
    %25 = vector.load %arg4[%c0_17, %c0_18] : memref<8x1xf32, #tpu.memory_space<vmem>>, vector<8x1xf32>
    %26 = vector.broadcast %25 : vector<8x1xf32> to vector<8x64xf32>
    %27 = arith.addf %24, %26 : vector<8x64xf32>
    %cst_19 = arith.constant 0.000000e+00 : f32
    %28 = vector.broadcast %cst_19 : f32 to vector<8x64xf32>
    %29 = arith.maximumf %27, %28 : vector<8x64xf32>
    %c0_20 = arith.constant 0 : index
    %c0_21 = arith.constant 0 : index
    %30 = vector.load %arg9[%c0_20, %c0_21] : memref<1x8xf32, #tpu.memory_space<vmem>>, vector<1x8xf32>
    %cst_22 = arith.constant dense<0.000000e+00> : vector<1x64xf32>
    %31 = tpu.matmul %30, %21, %cst_22 {dimension_numbers = #tpu.dot_dimension_numbers<[1], [0], [0], [1], [0, 0, 1, 1], [], []>} : vector<1x8xf32>, vector<8x64xf32>, vector<1x64xf32> -> vector<1x64xf32>
    %c0_23 = arith.constant 0 : index
    %c0_24 = arith.constant 0 : index
    %32 = vector.load %arg10[%c0_23, %c0_24] : memref<1x1xf32, #tpu.memory_space<vmem>>, vector<1x1xf32>
    %33 = vector.broadcast %32 : vector<1x1xf32> to vector<1x64xf32>
    %34 = arith.addf %31, %33 : vector<1x64xf32>
    %35 = arith.negf %34 : vector<1x64xf32>
    %36 = math.exp %35 : vector<1x64xf32>
    %cst_25 = arith.constant 1.000000e+00 : f32
    %37 = vector.broadcast %cst_25 : f32 to vector<1x64xf32>
    %38 = arith.addf %37, %36 : vector<1x64xf32>
    %39 = arith.divf %37, %38 : vector<1x64xf32>
    %c0_26 = arith.constant 0 : index
    %c0_27 = arith.constant 0 : index
    %40 = vector.load %arg11[%c0_26, %c0_27] : memref<1x8xf32, #tpu.memory_space<vmem>>, vector<1x8xf32>
    %cst_28 = arith.constant dense<0.000000e+00> : vector<1x64xf32>
    %41 = tpu.matmul %40, %29, %cst_28 {dimension_numbers = #tpu.dot_dimension_numbers<[1], [0], [0], [1], [0, 0, 1, 1], [], []>} : vector<1x8xf32>, vector<8x64xf32>, vector<1x64xf32> -> vector<1x64xf32>
    %c0_29 = arith.constant 0 : index
    %c0_30 = arith.constant 0 : index
    %42 = vector.load %arg12[%c0_29, %c0_30] : memref<1x1xf32, #tpu.memory_space<vmem>>, vector<1x1xf32>
    %43 = vector.broadcast %42 : vector<1x1xf32> to vector<1x64xf32>
    %44 = arith.addf %41, %43 : vector<1x64xf32>
    %45 = arith.negf %44 : vector<1x64xf32>
    %46 = math.exp %45 : vector<1x64xf32>
    %cst_31 = arith.constant 1.000000e+00 : f32
    %47 = vector.broadcast %cst_31 : f32 to vector<1x64xf32>
    %48 = arith.addf %47, %46 : vector<1x64xf32>
    %49 = arith.divf %47, %48 : vector<1x64xf32>
    %cst_32 = arith.constant 1.000000e+00 : f32
    %50 = vector.broadcast %cst_32 : f32 to vector<1x64xf32>
    %51 = arith.subf %50, %49 : vector<1x64xf32>
    %52 = arith.mulf %39, %51 : vector<1x64xf32>
    %c0_33 = arith.constant 0 : index
    %c0_34 = arith.constant 0 : index
    %53 = vector.load %arg13[%c0_33, %c0_34] : memref<1x64xf32, #tpu.memory_space<vmem>>, vector<1x64xf32>
    tpu.vector_store %arg13[%c0_33, %c0_34], %52 {strides = array<i32>} : memref<1x64xf32, #tpu.memory_space<vmem>>, vector<1x64xf32>,
    return
  }
  func.func @transform_0(%arg0: i32) -> (i32, i32) {
    %c0_i32 = arith.constant 0 : i32
    %c0_i32_0 = arith.constant 0 : i32
    %c0_i32_1 = arith.constant 0 : i32
    return %c0_i32, %c0_i32_0 : i32, i32
  }
  func.func @transform_1(%arg0: i32) -> (i32, i32) {
    %c0_i32 = arith.constant 0 : i32
    %c0_i32_0 = arith.constant 0 : i32
    %c0_i32_1 = arith.constant 0 : i32
    return %c0_i32, %c0_i32_0 : i32, i32
  }
  func.func @transform_2(%arg0: i32) -> (i32, i32) {
    %c0_i32 = arith.constant 0 : i32
    %c0_i32_0 = arith.constant 0 : i32
    %c0_i32_1 = arith.constant 0 : i32
    return %c0_i32, %c0_i32_0 : i32, i32
  }
  func.func @transform_3(%arg0: i32) -> (i32, i32) {
    %c0_i32 = arith.constant 0 : i32
    %c0_i32_0 = arith.constant 0 : i32
    %c0_i32_1 = arith.constant 0 : i32
    return %c0_i32, %c0_i32_0 : i32, i32
  }
  func.func @transform_4(%arg0: i32) -> (i32, i32) {
    %c0_i32 = arith.constant 0 : i32
    %c0_i32_0 = arith.constant 0 : i32
    %c0_i32_1 = arith.constant 0 : i32
    return %c0_i32, %c0_i32_0 : i32, i32
  }
  func.func @transform_5(%arg0: i32) -> (i32, i32) {
    %c0_i32 = arith.constant 0 : i32
    %c0_i32_0 = arith.constant 0 : i32
    %c0_i32_1 = arith.constant 0 : i32
    return %c0_i32, %c0_i32_0 : i32, i32
  }
  func.func @transform_6(%arg0: i32) -> (i32, i32) {
    %c0_i32 = arith.constant 0 : i32
    %c0_i32_0 = arith.constant 0 : i32
    %c0_i32_1 = arith.constant 0 : i32
    return %c0_i32, %c0_i32_0 : i32, i32
  }
  func.func @transform_7(%arg0: i32) -> (i32, i32) {
    %c0_i32 = arith.constant 0 : i32
    %c0_i32_0 = arith.constant 0 : i32
    %c0_i32_1 = arith.constant 0 : i32
    return %c0_i32, %c0_i32_0 : i32, i32
  }
  func.func @transform_8(%arg0: i32) -> (i32, i32) {
    %c0_i32 = arith.constant 0 : i32
    %c0_i32_0 = arith.constant 0 : i32
    %c0_i32_1 = arith.constant 0 : i32
    return %c0_i32, %c0_i32_0 : i32, i32
  }
  func.func @transform_9(%arg0: i32) -> (i32, i32) {
    %c0_i32 = arith.constant 0 : i32
    %c0_i32_0 = arith.constant 0 : i32
    %c0_i32_1 = arith.constant 0 : i32
    return %c0_i32, %c0_i32_0 : i32, i32
  }
  func.func @transform_10(%arg0: i32) -> (i32, i32) {
    %c0_i32 = arith.constant 0 : i32
    %c0_i32_0 = arith.constant 0 : i32
    %c0_i32_1 = arith.constant 0 : i32
    return %c0_i32, %c0_i32_0 : i32, i32
  }
  func.func @transform_11(%arg0: i32) -> (i32, i32) {
    %c0_i32 = arith.constant 0 : i32
    %c0_i32_0 = arith.constant 0 : i32
    %c0_i32_1 = arith.constant 0 : i32
    return %c0_i32, %c0_i32_0 : i32, i32
  }
  func.func @transform_12(%arg0: i32) -> (i32, i32) {
    %c0_i32 = arith.constant 0 : i32
    %c0_i32_0 = arith.constant 0 : i32
    %c0_i32_1 = arith.constant 0 : i32
    return %c0_i32, %c0_i32_0 : i32, i32
  }
}

</mosaic_0001>

<bundles_post_ra>
// kernel: tpu_custom_call.1
= control target key start
LH: loop header
LB: loop body
LE: loop exit
PB: predicated region body
PF: predicated region fallthrough
CT: control target
= control target key end

     0   :  { %s1140_s0 = inlined_call_operand.hbm [shape: f32[32,64], index: 0, kind: input, shape index: {}]   ;;  %s1141_s1 = inlined_call_operand.vmem [shape: f32[64,32], index: 1, kind: input, shape index: {}]   ;;  %s1142_s2 = inlined_call_operand.vmem [shape: f32[8,1], index: 2, kind: input, shape index: {}]   ;;  %s1143_s3 = inlined_call_operand.vmem [shape: f32[8,1], index: 3, kind: input, shape index: {}]   ;;  %s1144_s4 = inlined_call_operand.vmem [shape: f32[16,1], index: 4, kind: input, shape index: {}]   ;;  %s1145_s5 = inlined_call_operand.vmem [shape: f32[64,64], index: 5, kind: input, shape index: {}]   ;;  %s1146_s6 = inlined_call_operand.vmem [shape: f32[64,64], index: 6, kind: input, shape index: {}]   ;;  %s1147_s7 = inlined_call_operand.vmem [shape: f32[8,16], index: 7, kind: input, shape index: {}]   ;;  %s1148_s8 = inlined_call_operand.vmem [shape: f32[1,8], index: 8, kind: input, shape index: {}]   ;;  %s1149_s9 = inlined_call_operand.<no memory space> [shape: f32[1,1], index: 9, kind: input, shape index: {}]   ;;  %s1150_s10 = inlined_call_operand.vmem [shape: f32[1,8], index: 10, kind: input, shape index: {}]   ;;  %s1151_s12 = inlined_call_operand.hbm [shape: f32[1,64], index: 12, kind: output, shape index: {}]   ;;  %s1152_s11 = inlined_call_operand.<no memory space> [shape: f32[1,1], index: 11, kind: input, shape index: {}]  }
   0x1   :  { %v17_v0 = vstv %s1149_s9  ;;  %v19_v1 = vstv %s1152_s11 }
   0x2   :  { %18 = vst [vmem:[#allocation2] sm:$0x1] %v17_v0  ;;  %20 = vst [vmem:[#allocation3] sm:$0x1] %v19_v1 }
   0x3   :  { %21 = vsyncpa [#allocation5], 0 }
   0x4   :  { %22 = vsyncpa [#allocation6], 0  ;;  %s933_s25 = smov [#allocation4]   ;;  %s885_s29 = scalar_lea.hbm %s1140_s0, 512 }
   0x5   :  { %s28_s26 = sshll.u32 %s933_s25, 4  ;;  %p886_p0 = scmp.ne.s32.totalorder %s1140_s0, %s885_s29  ;;  %s29_s26 = int_to_ptr.vmem [resolvable:$true] %s28_s26 }
   0x6   :  { %p889_p1 = scmp.lt.u32.totalorder %s885_s29, %s1140_s0 }
   0x8   :  { %p891_p2 = pnand %p889_p1, %p886_p0 }
   0xa   :  { %894 = shalt.err (!%p891_p2)
}
   0xb   :  { %s895_s11 = scalar_lea.vmem %s29_s26, 512  ;;  %p900_p4 = scmp.lt.s32.totalorder %s29_s26, %s29_s26 }
   0xc   :  { %p896_p3 = scmp.ne.s32.totalorder %s29_s26, %s895_s11  ;;  %p901_p5 = scmp.lt.s32.totalorder %s895_s11, %s895_s11 }
   0xe   :  { %p902_p6 = por %p901_p5, %p900_p4 }
  0x10   :  { %p903_p7 = pnand %p902_p6, %p896_p3 }
  0x12   :  { %906 = shalt.err (!%p903_p7)
}
  0x13   :  { %s934_s15 = smov 128   ;;  %s935_s16 = smov 8  }
  0x14   :  { %34 = dma.hbm_to_vmem [thread:$0]  %s1140_s0, 512, %s29_s26, [#allocation5], %s934_s15, %s934_s15, %s935_s16  }
  0x15   :  { %929 = dma.done.wait [#allocation5], 512  }
  0x16   :  { %930 = vsyncadd [#allocation5], 4294966784  ;;  %v936_v2 = vmov 0   ;;  %vm72_vm0 = vcmask 261120   ;;  %v60_v3 = vld [vmem:[#allocation4] sm:$0xff]  ;;  %v61_v4 = vld [vmem:[#allocation4 + $0x8] sm:$0xff] }
  0x17   :  { %876 = vset.pattern.permute.xlu1 %v936_v2  ;;  %875 = vset.pattern.permute.xlu0 %v936_v2  ;;  %v62_v5 = vld [vmem:[#allocation4 + $0x10] sm:$0xff]  ;;  %v820_v6 = vpack.c.bf16 %v61_v4, %v60_v3  ;;  %v63_v7 = vld [vmem:[#allocation4 + $0x18] sm:$0xff]  ;;  %v203_v12 = vld [vmem:[%s1145_s5 + $0x8] sm:$0xff]  ;;  %vm210_vm1 = vcmask 523264   ;;  %v937_v53 = vmov 0.0|0.0   ;;  %vm938_vm2 = vmmov 0  }
  0x18   :  { %v64_v8 = vld [vmem:[%s1141_s1] sm:$0xff]  ;;  %v824_v9 = vpack.c.bf16 %v63_v7, %v62_v5  ;;  %v204_v14 = vld [vmem:[%s1145_s5 + $0x10] sm:$0xff]  ;;  %v205_v15 = vld [vmem:[%s1145_s5 + $0x18] sm:$0xff]  ;;  %v939_v54 = vmov 0.0   ;;  %vm406_vm3 = vcmask 130048   ;;  %vm500_vm4 = vcmask 64512  }
  0x19   :  { %753 = vmatprep.mubr.msk.f32.mxu0 %vm72_vm0, %v64_v8  ;;  %821 = vmatprep.subr.bf16.mxu0 %v820_v6  ;;  %v397_v10 = vld [vmem:[%s1142_s2] sm:$0xff]  ;;  %v832_v17 = vpack.c.bf16 %v205_v15, %v204_v14  ;;  %v207_v18 = vld [vmem:[%s1145_s5 + $0x28] sm:$0xff]  ;;  %v66_v23 = vld [vmem:[%s1141_s1 + $0x10] sm:$0xff]  ;;  %vm672_vm5 = vcmask 516096  }
  0x1a   :  { %823 = vmatpush3.bf16.msra.mxu0 %v820_v6  ;;  %v202_v11 = vld [vmem:[%s1145_s5] sm:$0xff]  ;;  %400 = vperm.xlu1 %876, %v397_v10   ;;  %v293_v20 = vld [vmem:[%s1146_s6 + $0x8] sm:$0xff]  ;;  %v67_v25 = vld [vmem:[%s1141_s1 + $0x18] sm:$0xff] }
  0x1b   :  { %825 = vmatprep.subr.bf16.mxu0 %v824_v9  ;;  %v828_v13 = vpack.c.bf16 %v203_v12, %v202_v11  ;;  %v206_v16 = vld [vmem:[%s1145_s5 + $0x20] sm:$0xff]  ;;  %v65_v22 = vld [vmem:[%s1141_s1 + $0x8] sm:$0xff]  ;;  %v70_v28 = vld [vmem:[%s1141_s1 + $0x30] sm:$0xff] }
  0x1c   :  { %v292_v19 = vld [vmem:[%s1146_s6] sm:$0xff]  ;;  %v836_v24 = vpack.c.bf16 %v207_v18, %v206_v16  ;;  %v69_v27 = vld [vmem:[%s1141_s1 + $0x28] sm:$0xff]  ;;  %v71_v29 = vld [vmem:[%s1141_s1 + $0x38] sm:$0xff] }
  0x1d   :  { %829 = vmatprep.subr.bf16.mxu1 %v828_v13  ;;  %v844_v21 = vpack.c.bf16 %v293_v20, %v292_v19  ;;  %v68_v26 = vld [vmem:[%s1141_s1 + $0x20] sm:$0xff]  ;;  %v208_v30 = vld [vmem:[%s1145_s5 + $0x30] sm:$0xff]  ;;  %v209_v31 = vld [vmem:[%s1145_s5 + $0x38] sm:$0xff]  ;;  %v496_v20 = vlaneseq }
  0x1e   :  { %827 = vmatpush3.bf16.msra.mxu0 %v824_v9  ;;  %831 = vmatpush3.bf16.msra.mxu1 %v828_v13  ;;  %v294_v32 = vld [vmem:[%s1146_s6 + $0x10] sm:$0xff]  ;;  %v840_v33 = vpack.c.bf16 %v209_v31, %v208_v30  ;;  %v295_v34 = vld [vmem:[%s1146_s6 + $0x18] sm:$0xff]  ;;  %v296_v36 = vld [vmem:[%s1146_s6 + $0x20] sm:$0xff] }
  0x1f   :  { %833 = vmatprep.subr.bf16.mxu1 %v832_v17  ;;  %845 = vmatprep.subr.bf16.mxu0 %v844_v21  ;;  %v848_v35 = vpack.c.bf16 %v295_v34, %v294_v32  ;;  %v297_v37 = vld [vmem:[%s1146_s6 + $0x28] sm:$0xff]  ;;  %v298_v39 = vld [vmem:[%s1146_s6 + $0x30] sm:$0xff]  ;;  %v299_v40 = vld [vmem:[%s1146_s6 + $0x38] sm:$0xff] }
  0x20   :  { %v852_v38 = vpack.c.bf16 %v297_v37, %v296_v36  ;;  %v856_v41 = vpack.c.bf16 %v299_v40, %v298_v39  ;;  %v383_v42 = vld [vmem:[%s1144_s4] sm:$0xff]  ;;  %v384_v43 = vld [vmem:[%s1144_s4 + $0x8] sm:$0xff] }
  0x21   :  { %754 = vmatmul.mubr.msk.f32.vlgmr.msra.gmra.mrb[0].mxu0 %vm72_vm0, %v65_v22  ;;  %387 = vperm.xlu0 %875, %v383_v42   ;;  %v581_v44 = vld [vmem:[#allocation3] sm:$0x1]  ;;  %v490_v56 = vld [vmem:[#allocation2] sm:$0x1] }
  0x22   :  { %756 = vmatprep.mubr.msk.f32.mxu0 %vm72_vm0, %v66_v23  ;;  %835 = vmatpush3.bf16.msra.mxu1 %v832_v17  ;;  %v481_v55 = vld [vmem:[%s1143_s3] sm:$0xff] }
  0x23   :  { %837 = vmatprep.subr.bf16.mxu1 %v836_v24  ;;  %847 = vmatpush3.bf16.msra.mxu0 %v844_v21  ;;  %v405_v8 = vld [vmem:[%s1147_s7] sm:$0xff]  ;;  %v497_v21 = vshrl.u32 %v496_v20, 7 }
  0x24   :  { %849 = vmatprep.subr.bf16.mxu0 %v848_v35  ;;  %484 = vperm.xlu1 %876, %v481_v55   ;;  %v489_v10 = vld [vmem:[%s1148_s8] sm:$0x1]  ;;  %s940_s8 = smov [#allocation7]  }
  0x25   :  { %757 = vmatmul.mubr.msk.f32.gmra.mrb[2].mxu0 %vm72_vm0, %v67_v25  ;;  %392 = vperm.xlu0 %875, %v384_v43   ;;  %v580_v18 = vld [vmem:[%s1150_s10] sm:$0x1]  ;;  %v498_v23 = vsub.s32 0, %v497_v21  ;;  %s680_s10 = sshll.u32 %s940_s8, 4  ;;  %s681_s10 = int_to_ptr.vmem [resolvable:$true] %s680_s10 }
  0x26   :  { %759 = vmatprep.mubr.msk.f32.mxu0 %vm72_vm0, %v68_v26  ;;  %839 = vmatpush3.bf16.msra.mxu1 %v836_v24  ;;  %s907_s2 = scalar_lea.vmem %s681_s10, 16  ;;  %s911_s30 = scalar_lea.vmem %s681_s10, 32 }
  0x27   :  { %841 = vmatprep.subr.bf16.mxu1 %v840_v33  ;;  %851 = vmatpush3.bf16.msra.mxu0 %v848_v35  ;;  %p908_p8 = scmp.ne.s32.totalorder %s681_s10, %s907_s2  ;;  %p912_p9 = scmp.lt.s32.totalorder %s681_s10, %s681_s10 }
  0x28   :  { %853 = vmatprep.subr.bf16.mxu0 %v852_v38  ;;  %493 = vperm.xlu1 %876, %v490_v56   ;;  %p913_p10 = scmp.lt.s32.totalorder %s911_s30, %s907_s2 }
  0x29   :  { %760 = vmatmul.mubr.msk.f32.gmra.mrb[4].mxu0 %vm72_vm0, %v69_v27  ;;  %584 = vperm.xlu0 %875, %v581_v44  }
  0x2a   :  { %762 = vmatprep.mubr.msk.f32.mxu0 %vm72_vm0, %v70_v28  ;;  %843 = vmatpush3.bf16.msra.mxu1 %v840_v33  ;;  %p914_p11 = por %p913_p10, %p912_p9 }
  0x2b   :  { %855 = vmatpush3.bf16.msra.mxu0 %v852_v38  ;;  %860 = vmatprep.subr.bf16.mxu1 %v937_v53 }
  0x2c   :  { %857 = vmatprep.subr.bf16.mxu0 %v856_v41  ;;  %p915_p12 = pnand %p914_p11, %p908_p8 }
  0x2d   :  { %763 = vmatmul.mubr.msk.f32.gmra.mrb[6].mxu0 %vm72_vm0, %v71_v29 }
  0x2f   :  { %859 = vmatpush3.bf16.msra.mxu0 %v856_v41 }
  0x99   :  { %v401_v3 = vpop.permute.xlu1 %400 }
  0xa0   :  { %v388_v61 = vpop.permute.xlu0 %387 }
  0xa3   :  { %v485_v14 = vpop.permute.xlu1 %484 }
  0xa4   :  { %v393_v1 = vpop.permute.xlu0 %392 }
  0xa7   :  { %v494_v22 = vpop.permute.xlu1 %493 }
  0xa8   :  { %v499_v24 = vrot.slane %v494_v22, %v498_v23  ;;  %v585_v26 = vpop.permute.xlu0 %584 }
  0xa9   :  { %v590_v27 = vrot.slane %v585_v26, %v498_v23 }
  0xf4   :  { %v755_v45 = vpop.f32.mrb[0].mxu0 }
  0xf5   :  { %v163_v46 = vpop.f32.mrb[1].mxu0 }
  0xf6   :  { %v403_v6 = vadd.f32 %v401_v3, %v163_v46 }
  0xf8   :  { %v758_v47 = vpop.f32.mrb[2].mxu0  ;;  %v404_v9 = vmax.f32 %v403_v6, 0.0 }
  0xf9   :  { %v173_v48 = vpop.f32.mrb[3].mxu0 }
  0xfa   :  { %781 = vmatprep.mubr.msk.f32.mxu1 %vm210_vm1, %v173_v48 }
  0xfb   :  { %782 = vmatmul.mubr.msk.f32.vlgmr.msra.gmra.mrb[0].mxu1 %vm210_vm1, %v758_v47 }
  0xfc   :  { %v761_v49 = vpop.f32.mrb[4].mxu0  ;;  %807 = vmatprep.mubr.msk.f32.mxu1 %vm938_vm2, %v939_v54 }
  0xfd   :  { %v183_v50 = vpop.f32.mrb[5].mxu0 }
 0x100   :  { %v764_v51 = vpop.f32.mrb[6].mxu0 }
 0x101   :  { %v193_v52 = vpop.f32.mrb[7].mxu0 }
 0x102   :  { %800 = vmatprep.mubr.msk.f32.mxu0 %vm210_vm1, %v193_v52 }
 0x103   :  { %801 = vmatmul.mubr.msk.f32.vlgmr.msra.gmra.mrb[8].mxu0 %vm210_vm1, %v764_v51 }
 0x1ce   :  { %v783_v57 = vpop.f32.mrb[0].mxu1 }
 0x1cf   :  { %v289_v58 = vadd.f32 %v783_v57, %v761_v49  ;;  %v283_v59 = vpop.f32.mrb[1].mxu1 }
 0x1d0   :  { %v284_v60 = vadd.f32 %v283_v59, %v183_v50 }
 0x1d6   :  { %v802_v62 = vpop.f32.mrb[8].mxu0 }
 0x1d7   :  { %v382_v63 = vadd.f32 %v802_v62, %v289_v58  ;;  %v372_v0 = vpop.f32.mrb[9].mxu0 }
 0x1d8   :  { %v381_v2 = vadd.f32 %v372_v0, %v284_v60 }
 0x1d9   :  { %v396_v4 = vadd.f32 %v393_v1, %v382_v63 }
 0x1da   :  { %v395_v5 = vadd.f32 %v388_v61, %v381_v2 }
 0x1dc   :  { %v861_v7 = vpack.c.bf16 %v396_v4, %v395_v5 }
 0x1de   :  { %862 = vmatpush3.bf16.msra.mxu1 %v861_v7 }
 0x1df   :  { %810 = vmatprep.subr.mxu1 %v939_v54 }
 0x1e1   :  { %808 = vmatmul.mubr.msk.f32.vlgmr.msra.gmra.mrb[2].mxu1 %vm406_vm3, %v405_v8 }
 0x1e2   :  { %811 = vmatpush3.msra.mxu1 %v404_v9  ;;  %812 = vmatprep.mubr.msk.f32.mxu1 %vm938_vm2, %v939_v54 }
 0x1e3   :  { %815 = vmatprep.subr.mxu1 %v939_v54 }
 0x1e5   :  { %813 = vmatmul.mubr.msk.f32.vlgmr.msra.gmra.mrb[4].mxu1 %vm500_vm4, %v489_v10 }
 0x1e6   :  { %817 = vmatprep.mubr.msk.f32.mxu1 %vm938_vm2, %v939_v54 }
 0x2b4   :  { %v476_v11 = vpop.f32.mrb[2].mxu1 }
 0x2b5   :  { %v480_v12 = vadd.f32 %v755_v45, %v476_v11  ;;  %v809_v13 = vpop.f32.mrb[3].mxu1 }
 0x2b7   :  { %v487_v15 = vadd.f32 %v485_v14, %v480_v12 }
 0x2b8   :  { %v570_v16 = vpop.f32.mrb[4].mxu1 }
 0x2b9   :  { %v488_v17 = vmax.f32 %v487_v15, 0.0  ;;  %v814_v19 = vpop.f32.mrb[5].mxu1  ;;  %v571_v25 = vadd.f32 %v570_v16, %v499_v24 }
 0x2bb   :  { %816 = vmatpush3.msra.mxu1 %v488_v17  ;;  %v703_v28 = vmul.f32 -1.442695, %v571_v25 }
 0x2bc   :  { %818 = vmatmul.mubr.msk.f32.vlgmr.msra.gmra.mrb[6].mxu1 %vm500_vm4, %v580_v18 }
 0x2bd   :  { %877 = vpow2.f32 %v703_v28 }
 0x2c7   :  { %v878_v33 = vpop.eup %877 }
 0x2c8   :  { %v577_v35 = vadd.f32 1.0, %v878_v33 }
 0x38f   :  { %v660_v29 = vpop.f32.mrb[6].mxu1 }
 0x390   :  { %v661_v30 = vadd.f32 %v660_v29, %v590_v27  ;;  %v819_v31 = vpop.f32.mrb[7].mxu1 }
 0x392   :  { %v705_v32 = vmul.f32 -1.442695, %v661_v30 }
 0x394   :  { %879 = vpow2.f32 %v705_v32 }
 0x39e   :  { %v880_v34 = vpop.eup %879 }
 0x39f   :  { %v667_v36 = vadd.f32 1.0, %v880_v34 }
 0x3a1   :  { %881 = vrcp.f32 %v667_v36 }
 0x3a2   :  { %883 = vrcp.f32 %v577_v35 }
 0x3ab   :  { %v882_v37 = vpop.eup %881 }
 0x3ac   :  { %v670_v38 = vsub.f32 1.0, %v882_v37  ;;  %v884_v39 = vpop.eup %883 }
 0x3ae   :  { %v671_v40 = vmul.f32 %v884_v39, %v670_v38 }
 0x3b0   :  { %673 = vst.msk [vmem:[#allocation7] sm:$0x1] %vm672_vm5, %v671_v40 }
 0x3b1   :  { %918 = shalt.err (!%p915_p12)
}
 0x3b2   :  { %s919_s14 = scalar_lea.hbm %s1151_s12, 16 }
 0x3b3   :  { %p920_p13 = scmp.ne.s32.totalorder %s1151_s12, %s919_s14  ;;  %p923_p0 = scmp.lt.u32.totalorder %s919_s14, %s1151_s12 }
 0x3b5   :  { %p925_p1 = pnand %p923_p0, %p920_p13 }
 0x3b7   :  { %928 = shalt.err (!%p925_p1)
}
 0x3b8   :  { %683 = dma.vmem_to_hbm [thread:$0]  %s681_s10, 16, %s1151_s12, [#allocation6]  }
 0x3b9   :  { %931 = dma.done.wait [#allocation6], 16  }
 0x3ba   :  { %932 = vsyncadd [#allocation6], 4294967280 }
 0x3bb   :  { %687 = vsyncpa [#allocation5], 1 }
 0x3bc   :  { %688 = vsyncpa [#allocation6], 1 }

</bundles_post_ra>
